<compile_context>
chip_gen: v7x
topology: tpu7x:2x2x1
jax: 0.10.0
libtpu: 0.0.40
codegen_flags: <defaults>
</compile_context>

<pallas_src>
import jax
import jax.numpy as jnp
from jax.experimental import pallas as pl
from jax.experimental.pallas import tpu as pltpu

SUBLANE = 8


def _round_up(n, m):
    return ((n + m - 1) // m) * m


def mlp_kernel(x_ref, w1_ref, b1_ref, w2_ref, b2_ref, o_ref):
    x = x_ref[...]                                   # [TM, K_in]  (K_in = 2)
    k_in = x_ref.shape[1]

    # fc1: K_in is tiny (2) -> skip the MXU, do VPU broadcast-FMAs instead.
    h = b1_ref[...]                                  # [1, H] (broadcasts)
    for k in range(k_in):                            # static unroll, K = 2
        h = h + x[:, k:k + 1] * w1_ref[k:k + 1, :]   # [TM,1] * [1,H] -> [TM,H]
    h = jnp.maximum(h, 0.0)                          # ReLU

    # fc2: one small MXU dot; output stays compact [TM, out_size] (4 lanes),
    # so the HBM writeback is 16 B/sample instead of 512 B/sample.
    y = jnp.dot(h, w2_ref[...], preferred_element_type=jnp.float32)
    o_ref[...] = (y + b2_ref[...]).astype(o_ref.dtype)


def mlp_forward(x, w1, b1, w2, b2, *, tm=None):
    batch, in_size = x.shape
    hidden = w1.shape[1]
    out_size = w2.shape[1]

    if tm is None:
        # Big tiles to amortize the ~0.35 us/step overhead, but keep >= 2 grid
        # steps whenever batch >= 16 so the "parallel" axis actually splits
        # across v7x's two TensorCores.  VMEM at tm=2048: x/h/out tiles are
        # ~1 MB each (well under the scoped-VMEM default, even double-buffered).
        tm = min(2048, _round_up(max((batch + 1) // 2, SUBLANE), SUBLANE))
        tm = min(tm, _round_up(batch, SUBLANE))

    grid = (pl.cdiv(batch, tm),)  # ragged final tile handled by Pallas

    return pl.pallas_call(
        mlp_kernel,
        out_shape=jax.ShapeDtypeStruct((batch, out_size), jnp.float32),
        grid=grid,
        in_specs=[
            pl.BlockSpec((tm, in_size), lambda i: (i, 0)),       # x: tiled over batch
            pl.BlockSpec((in_size, hidden), lambda i: (0, 0)),   # W1: resident (full array)
            pl.BlockSpec((1, hidden), lambda i: (0, 0)),         # b1: resident
            pl.BlockSpec((hidden, out_size), lambda i: (0, 0)),  # W2: resident
            pl.BlockSpec((1, out_size), lambda i: (0, 0)),       # b2: resident
        ],
        out_specs=pl.BlockSpec((tm, out_size), lambda i: (i, 0)),  # compact output
        compiler_params=pltpu.CompilerParams(
            dimension_semantics=("parallel",),                   # v7x: 2 TCs/chip
        ),
    )(x, w1, b1, w2, b2)


def init_params(key, input_size, hidden_size, output_size):
    # Deterministic init mimicking nn.Linear's U(-1/sqrt(fan_in), 1/sqrt(fan_in)).
    k1, k2, k3, k4 = jax.random.split(key, 4)
    bound1 = 1.0 / jnp.sqrt(jnp.float32(input_size))
    bound2 = 1.0 / jnp.sqrt(jnp.float32(hidden_size))
    # Stored already transposed: [in, hidden], [hidden, out]
    w1 = jax.random.uniform(k1, (input_size, hidden_size), jnp.float32, -bound1, bound1)
    b1 = jax.random.uniform(k2, (1, hidden_size), jnp.float32, -bound1, bound1)
    w2 = jax.random.uniform(k3, (hidden_size, output_size), jnp.float32, -bound2, bound2)
    b2 = jax.random.uniform(k4, (1, output_size), jnp.float32, -bound2, bound2)
    return w1, b1, w2, b2


if __name__ == "__main__":
    input_size, hidden_size, output_size = 2, 32, 4
    batch = 8

    key = jax.random.PRNGKey(0)
    kx, kp = jax.random.split(key)
    x = jax.random.normal(kx, (batch, input_size), jnp.float32)
    w1, b1, w2, b2 = init_params(kp, input_size, hidden_size, output_size)

    out = jax.block_until_ready(mlp_forward(x, w1, b1, w2, b2))

    # Pure-JAX reference (same math as the PyTorch module).
    ref = jnp.maximum(x @ w1 + b1, 0.0) @ w2 + b2
    assert out.shape == (batch, output_size)
    assert jnp.allclose(out, ref, atol=1e-5, rtol=1e-5)

    print("KERNEL_OK")
</pallas_src>

<mosaic_0001>
module attributes {stable_mosaic.version = 11 : i64} {
  func.func @mlp_kernel(%arg0: i32, %arg1: memref<8x2xf32, #tpu.memory_space<vmem>>, %arg2: memref<2x32xf32, #tpu.memory_space<vmem>>, %arg3: memref<1x32xf32, #tpu.memory_space<vmem>>, %arg4: memref<32x4xf32, #tpu.memory_space<vmem>>, %arg5: memref<1x4xf32, #tpu.memory_space<vmem>>, %arg6: memref<8x4xf32, #tpu.memory_space<vmem>>) attributes {dimension_semantics = [#tpu.dimension_semantics<parallel>], iteration_bounds = array<i64: 1>, scalar_prefetch = 0 : i64, scratch_operands = 0 : i64, tpu.core_type = #tpu.core_type<tc>, window_params = [{transform_indices = @transform_0, window_bounds = array<i64: 8, 2>}, {pipeline_mode = #tpu.pipeline_mode<synchronous>, transform_indices = @transform_1, window_bounds = array<i64: 2, 32>}, {pipeline_mode = #tpu.pipeline_mode<synchronous>, transform_indices = @transform_2, window_bounds = array<i64: 1, 32>}, {pipeline_mode = #tpu.pipeline_mode<synchronous>, transform_indices = @transform_3, window_bounds = array<i64: 32, 4>}, {pipeline_mode = #tpu.pipeline_mode<synchronous>, transform_indices = @transform_4, window_bounds = array<i64: 1, 4>}, {transform_indices = @transform_5, window_bounds = array<i64: 8, 4>}]} {
    %c0 = arith.constant 0 : index
    %c0_0 = arith.constant 0 : index
    %0 = vector.load %arg1[%c0, %c0_0] : memref<8x2xf32, #tpu.memory_space<vmem>>, vector<8x2xf32>
    %c0_1 = arith.constant 0 : index
    %c0_2 = arith.constant 0 : index
    %1 = vector.load %arg3[%c0_1, %c0_2] : memref<1x32xf32, #tpu.memory_space<vmem>>, vector<1x32xf32>
    %2 = vector.extract_strided_slice %0 {offsets = [0, 0], sizes = [8, 1], strides = [1, 1]} : vector<8x2xf32> to vector<8x1xf32>
    %c0_3 = arith.constant 0 : index
    %c0_4 = arith.constant 0 : index
    %3 = vector.load %arg2[%c0_3, %c0_4] : memref<2x32xf32, #tpu.memory_space<vmem>>, vector<1x32xf32>
    %4 = vector.broadcast %2 : vector<8x1xf32> to vector<8x32xf32>
    %5 = vector.broadcast %3 : vector<1x32xf32> to vector<8x32xf32>
    %6 = arith.mulf %4, %5 : vector<8x32xf32>
    %7 = vector.broadcast %1 : vector<1x32xf32> to vector<8x32xf32>
    %8 = arith.addf %7, %6 : vector<8x32xf32>
    %9 = vector.extract_strided_slice %0 {offsets = [0, 1], sizes = [8, 1], strides = [1, 1]} : vector<8x2xf32> to vector<8x1xf32>
    %c1 = arith.constant 1 : index
    %c0_5 = arith.constant 0 : index
    %10 = vector.load %arg2[%c1, %c0_5] : memref<2x32xf32, #tpu.memory_space<vmem>>, vector<1x32xf32>
    %11 = vector.broadcast %9 : vector<8x1xf32> to vector<8x32xf32>
    %12 = vector.broadcast %10 : vector<1x32xf32> to vector<8x32xf32>
    %13 = arith.mulf %11, %12 : vector<8x32xf32>
    %14 = arith.addf %8, %13 : vector<8x32xf32>
    %cst = arith.constant 0.000000e+00 : f32
    %15 = vector.broadcast %cst : f32 to vector<8x32xf32>
    %16 = arith.maximumf %14, %15 : vector<8x32xf32>
    %c0_6 = arith.constant 0 : index
    %c0_7 = arith.constant 0 : index
    %17 = vector.load %arg4[%c0_6, %c0_7] : memref<32x4xf32, #tpu.memory_space<vmem>>, vector<32x4xf32>
    %cst_8 = arith.constant dense<0.000000e+00> : vector<8x4xf32>
    %18 = tpu.matmul %16, %17, %cst_8 {dimension_numbers = #tpu.dot_dimension_numbers<[1], [0], [0], [1], [0, 0, 1, 1], [], []>} : vector<8x32xf32>, vector<32x4xf32>, vector<8x4xf32> -> vector<8x4xf32>
    %c0_9 = arith.constant 0 : index
    %c0_10 = arith.constant 0 : index
    %19 = vector.load %arg5[%c0_9, %c0_10] : memref<1x4xf32, #tpu.memory_space<vmem>>, vector<1x4xf32>
    %20 = vector.broadcast %19 : vector<1x4xf32> to vector<8x4xf32>
    %21 = arith.addf %18, %20 : vector<8x4xf32>
    %c0_11 = arith.constant 0 : index
    %c0_12 = arith.constant 0 : index
    %22 = vector.load %arg6[%c0_11, %c0_12] : memref<8x4xf32, #tpu.memory_space<vmem>>, vector<8x4xf32>
    tpu.vector_store %arg6[%c0_11, %c0_12], %21 {strides = array<i32>} : memref<8x4xf32, #tpu.memory_space<vmem>>, vector<8x4xf32>,
    return
  }
  func.func @transform_0(%arg0: i32) -> (i32, i32) {
    %c0_i32 = arith.constant 0 : i32
    %c0_i32_0 = arith.constant 0 : i32
    return %arg0, %c0_i32 : i32, i32
  }
  func.func @transform_1(%arg0: i32) -> (i32, i32) {
    %c0_i32 = arith.constant 0 : i32
    %c0_i32_0 = arith.constant 0 : i32
    %c0_i32_1 = arith.constant 0 : i32
    return %c0_i32, %c0_i32_0 : i32, i32
  }
  func.func @transform_2(%arg0: i32) -> (i32, i32) {
    %c0_i32 = arith.constant 0 : i32
    %c0_i32_0 = arith.constant 0 : i32
    %c0_i32_1 = arith.constant 0 : i32
    return %c0_i32, %c0_i32_0 : i32, i32
  }
  func.func @transform_3(%arg0: i32) -> (i32, i32) {
    %c0_i32 = arith.constant 0 : i32
    %c0_i32_0 = arith.constant 0 : i32
    %c0_i32_1 = arith.constant 0 : i32
    return %c0_i32, %c0_i32_0 : i32, i32
  }
  func.func @transform_4(%arg0: i32) -> (i32, i32) {
    %c0_i32 = arith.constant 0 : i32
    %c0_i32_0 = arith.constant 0 : i32
    %c0_i32_1 = arith.constant 0 : i32
    return %c0_i32, %c0_i32_0 : i32, i32
  }
  func.func @transform_5(%arg0: i32) -> (i32, i32) {
    %c0_i32 = arith.constant 0 : i32
    %c0_i32_0 = arith.constant 0 : i32
    return %arg0, %c0_i32 : i32, i32
  }
}

</mosaic_0001>

<bundles_post_ra>
// kernel: tpu_custom_call.1
= control target key start
LH: loop header
LB: loop body
LE: loop exit
PB: predicated region body
PF: predicated region fallthrough
CT: control target
= control target key end

     0   :  { %v177_v0 = vmov 0   ;;  %v178_v5 = vmov 0.0|0.0   ;;  %v179_v6 = vmov 1   ;;  %vm180_vm0 = vmmov 0   ;;  %s242_s0 = inlined_call_operand.vmem [shape: f32[8,2], index: 0, kind: input, shape index: {}]   ;;  %s243_s3 = inlined_call_operand.vmem [shape: f32[32,4], index: 3, kind: input, shape index: {}]   ;;  %s244_s1 = inlined_call_operand.vmem [shape: f32[2,32], index: 1, kind: input, shape index: {}]   ;;  %s245_s2 = inlined_call_operand.vmem [shape: f32[1,32], index: 2, kind: input, shape index: {}]   ;;  %s246_s4 = inlined_call_operand.vmem [shape: f32[1,4], index: 4, kind: input, shape index: {}]   ;;  %s247_s5 = inlined_call_operand.vmem [shape: f32[8,4], index: 5, kind: output, shape index: {}]  }
   0x1   :  { %175 = vset.pattern.permute.xlu0 %v177_v0  ;;  %v20_v1 = vld [vmem:[%s242_s0] sm:$0xff]  ;;  %v53_v3 = vld [vmem:[%s243_s3 + $0x8] sm:$0xff]  ;;  %164 = vmatprep.subr.bf16.mxu0 %v178_v5  ;;  %v54_v7 = vld [vmem:[%s243_s3 + $0x10] sm:$0xff]  ;;  %v181_v10 = vmov 0.0   ;;  %vm63_vm1 = vcmask 261120   ;;  %vm137_vm2 = vcmask 31744  }
   0x2   :  { %25 = vperm.xlu0 %175, %v20_v1   ;;  %v52_v2 = vld [vmem:[%s243_s3] sm:$0xff]  ;;  %v55_v8 = vld [vmem:[%s243_s3 + $0x18] sm:$0xff]  ;;  %161 = vmatprep.mubr.msk.f32.mxu0 %vm180_vm0, %v181_v10 }
   0x3   :  { %v165_v4 = vpack.c.bf16 %v53_v3, %v52_v2  ;;  %v168_v9 = vpack.c.bf16 %v55_v8, %v54_v7  ;;  %v143_v11 = vld [vmem:[%s244_s1] ss:$0 sm:$0xff]  ;;  %v145_v15 = vld [vmem:[%s244_s1 + $0x1] ss:$0 sm:$0xff] }
   0x4   :  { %v144_v14 = vld [vmem:[%s245_s2] ss:$0 sm:$0xff] }
   0x5   :  { %166 = vmatpush3.bf16.msra.mxu0 %v165_v4  ;;  %v146_v21 = vld [vmem:[%s246_s4] ss:$0 sm:$0xff] }
   0x6   :  { %176 = vset.pattern.permute.xlu0 %v179_v6  ;;  %167 = vmatprep.subr.bf16.mxu0 %v178_v5 }
   0x7   :  { %42 = vperm.xlu0 %176, %v20_v1  }
   0x9   :  { %169 = vmatpush3.bf16.msra.mxu0 %v168_v9 }
  0x81   :  { %v26_v12 = vpop.permute.xlu0 %25 }
  0x82   :  { %v32_v13 = vmul.f32 %v143_v11, %v26_v12 }
  0x84   :  { %v39_v17 = vadd.f32 %v144_v14, %v32_v13 }
  0x86   :  { %v43_v16 = vpop.permute.xlu0 %42 }
  0x87   :  { %v49_v18 = vmul.f32 %v145_v15, %v43_v16 }
  0x89   :  { %v50_v19 = vadd.f32 %v49_v18, %v39_v17 }
  0x8b   :  { %v51_v20 = vmax.f32 %v50_v19, 0.0 }
  0x8d   :  { %162 = vmatmul.mubr.msk.f32.vlgmr.msra.gmra.mrb[0].mxu0 %vm63_vm1, %v51_v20 }
 0x160   :  { %v133_v22 = vpop.f32.mrb[0].mxu0 }
 0x161   :  { %v134_v23 = vadd.f32 %v146_v21, %v133_v22  ;;  %v163_v24 = vpop.f32.mrb[1].mxu0 }
 0x163   :  { %138 = vst.msk [vmem:[%s247_s5] sm:$0xff] %vm137_vm2, %v134_v23 }

</bundles_post_ra>
